<compile_context>
chip_gen: v7x
topology: tpu7x:2x2x1
jax: 0.10.0
libtpu: 0.0.40
codegen_flags: <defaults>
</compile_context>

<pallas_src>
import functools

import jax
import jax.numpy as jnp
from jax.experimental import pallas as pl
from jax.experimental.pallas import tpu as pltpu


def _round_up(x, m):
    return (x + m - 1) // m * m


def critic_twin_kernel(s_ref, a_ref, w1s_ref, w1a_ref, w2_ref, w3_ref, b_ref,
                       q_ref, *, hidden, mxu_dtype):
    H = hidden
    dt = mxu_dtype

    # Fused layer 1 for both heads; concat(state, action) folded into two dots
    # against the row-split of W1, accumulated in f32.
    h = (jnp.dot(s_ref[...].astype(dt), w1s_ref[...].astype(dt),
                 preferred_element_type=jnp.float32)
         + jnp.dot(a_ref[...].astype(dt), w1a_ref[...].astype(dt),
                   preferred_element_type=jnp.float32)
         + b_ref[0:1, :])
    h = jnp.maximum(h, 0.0)

    # Fused layer 2: block-diagonal (2H, 2H); off-diagonal blocks are exact
    # zeros so Q1 / Q2 remain independent MLPs.
    h = (jnp.dot(h.astype(dt), w2_ref[...].astype(dt),
                 preferred_element_type=jnp.float32)
         + b_ref[1:2, :])
    h = jnp.maximum(h, 0.0)

    # Final 1-wide layer per head: elementwise multiply + lane reduction (XLU),
    # never an N=1 MXU matmul.
    q1 = jnp.sum(h[:, :H] * w3_ref[0:1, :], axis=-1, keepdims=True) + b_ref[2:3, 0:1]
    q2 = jnp.sum(h[:, H:] * w3_ref[1:2, :], axis=-1, keepdims=True) + b_ref[2:3, 1:2]

    # Merged lane-adjacent output slab (single store / single output DMA).
    q_ref[...] = jnp.concatenate([q1, q2], axis=-1)


def critic_twin_forward(state, action, params, *, block_b=512,
                        mxu_dtype=jnp.float32):
    """params = (W1 (d_in,2H), W2 (2H,2H) block-diag, W3 (2,H), B (3,2H))."""
    w1, w2, w3, b = params
    B, n_states = state.shape
    n_actions = action.shape[1]
    H = w3.shape[1]
    d_in = n_states + n_actions
    assert w1.shape == (d_in, 2 * H) and w2.shape == (2 * H, 2 * H)

    # Split W1 rows once in the wrapper (state slab / action slab) so the
    # kernel never performs an in-kernel sublane slice.
    w1s = w1[:n_states, :]
    w1a = w1[n_states:, :]

    # Batch tile: multiple of 8 sublanes, capped so double-buffered activation
    # tiles stay well inside v7x's smaller (64 MiB phys / 32 MiB scoped) VMEM.
    TB = min(block_b, _round_up(B, 8))
    padded_B = _round_up(B, TB)
    if padded_B != B:
        pad = padded_B - B
        state = jnp.pad(state, ((0, pad), (0, 0)))
        action = jnp.pad(action, ((0, pad), (0, 0)))

    kernel = functools.partial(critic_twin_kernel, hidden=H,
                               mxu_dtype=mxu_dtype)

    def resident(shape):  # weights: same block every grid step -> stay in VMEM
        return pl.BlockSpec(shape, lambda i: (0, 0))

    q = pl.pallas_call(
        kernel,
        out_shape=jax.ShapeDtypeStruct((padded_B, 2), jnp.float32),
        grid_spec=pltpu.PrefetchScalarGridSpec(
            num_scalar_prefetch=0,
            grid=(padded_B // TB,),
            in_specs=[
                pl.BlockSpec((TB, n_states), lambda i: (i, 0)),
                pl.BlockSpec((TB, n_actions), lambda i: (i, 0)),
                resident(w1s.shape),
                resident(w1a.shape),
                resident(w2.shape),
                resident(w3.shape),
                resident(b.shape),
            ],
            out_specs=pl.BlockSpec((TB, 2), lambda i: (i, 0)),
        ),
        compiler_params=pltpu.CompilerParams(
            dimension_semantics=("parallel",)),  # lets v7x shard batch over 2 TCs
    )(state, action, w1s, w1a, w2, w3, b)

    q = q[:B]
    return q[:, 0:1], q[:, 1:2]


def init_params(key, n_states, n_actions, hidden):
    """Deterministic init mirroring two independent PyTorch MLP heads,
    stored directly in the fused layout consumed by the kernel."""
    d_in = n_states + n_actions
    H = hidden
    ks = jax.random.split(key, 12)

    def u(k, shape, fan_in):
        bound = 1.0 / jnp.sqrt(fan_in)
        return jax.random.uniform(k, shape, jnp.float32, -bound, bound)

    # per-head raw weights (nn.Linear-style fan-in bound)
    w11 = u(ks[0], (d_in, H), d_in); b11 = u(ks[1], (H,), d_in)
    w12 = u(ks[2], (H, H), H);       b12 = u(ks[3], (H,), H)
    w13 = u(ks[4], (H,), H);         b13 = u(ks[5], (), H)
    w21 = u(ks[6], (d_in, H), d_in); b21 = u(ks[7], (H,), d_in)
    w22 = u(ks[8], (H, H), H);       b22 = u(ks[9], (H,), H)
    w23 = u(ks[10], (H,), H);        b23 = u(ks[11], (), H)

    # fused slabs
    w1 = jnp.concatenate([w11, w21], axis=1)                       # (d_in, 2H)
    w2 = jnp.zeros((2 * H, 2 * H), jnp.float32)                    # block-diag,
    w2 = w2.at[:H, :H].set(w12).at[H:, H:].set(w22)                # off-diag exact 0
    w3 = jnp.stack([w13, w23], axis=0)                             # (2, H)
    b = jnp.zeros((3, 2 * H), jnp.float32)
    b = b.at[0, :H].set(b11).at[0, H:].set(b21)
    b = b.at[1, :H].set(b12).at[1, H:].set(b22)
    b = b.at[2, 0].set(b13).at[2, 1].set(b23)
    return (w1, w2, w3, b)


def reference_forward(state, action, params):
    """Pure-JAX reference with the original (unfused, per-head) semantics."""
    w1, w2, w3, b = params
    H = w3.shape[1]
    cat = jnp.concatenate([state, action], axis=-1)

    def head(i):
        sl = slice(i * H, (i + 1) * H)
        h = jnp.maximum(cat @ w1[:, sl] + b[0, sl], 0.0)
        h = jnp.maximum(h @ w2[sl, sl] + b[1, sl], 0.0)
        return jnp.sum(h * w3[i], axis=-1, keepdims=True) + b[2, i]

    return head(0), head(1)


if __name__ == "__main__":
    B, n_states, n_actions, hidden = 8, 8, 4, 32

    key = jax.random.PRNGKey(0)
    k_s, k_a, k_p = jax.random.split(key, 3)
    state = jax.random.normal(k_s, (B, n_states), jnp.float32)
    action = jax.random.normal(k_a, (B, n_actions), jnp.float32)
    params = init_params(k_p, n_states, n_actions, hidden)

    q1, q2 = critic_twin_forward(state, action, params)
    jax.block_until_ready((q1, q2))

    r1, r2 = reference_forward(state, action, params)
    assert q1.shape == (B, 1) and q2.shape == (B, 1)
    assert jnp.allclose(q1, r1, atol=1e-5, rtol=1e-5)
    assert jnp.allclose(q2, r2, atol=1e-5, rtol=1e-5)

    print("KERNEL_OK")
</pallas_src>

<mosaic_0001>
module attributes {stable_mosaic.version = 11 : i64} {
  func.func @critic_twin_kernel(%arg0: i32, %arg1: memref<8x8xf32, #tpu.memory_space<vmem>>, %arg2: memref<8x4xf32, #tpu.memory_space<vmem>>, %arg3: memref<8x64xf32, #tpu.memory_space<vmem>>, %arg4: memref<4x64xf32, #tpu.memory_space<vmem>>, %arg5: memref<64x64xf32, #tpu.memory_space<vmem>>, %arg6: memref<2x32xf32, #tpu.memory_space<vmem>>, %arg7: memref<3x64xf32, #tpu.memory_space<vmem>>, %arg8: memref<8x2xf32, #tpu.memory_space<vmem>>) attributes {dimension_semantics = [#tpu.dimension_semantics<parallel>], iteration_bounds = array<i64: 1>, scalar_prefetch = 0 : i64, scratch_operands = 0 : i64, tpu.core_type = #tpu.core_type<tc>, window_params = [{transform_indices = @transform_0, window_bounds = array<i64: 8, 8>}, {transform_indices = @transform_1, window_bounds = array<i64: 8, 4>}, {pipeline_mode = #tpu.pipeline_mode<synchronous>, transform_indices = @transform_2, window_bounds = array<i64: 8, 64>}, {pipeline_mode = #tpu.pipeline_mode<synchronous>, transform_indices = @transform_3, window_bounds = array<i64: 4, 64>}, {pipeline_mode = #tpu.pipeline_mode<synchronous>, transform_indices = @transform_4, window_bounds = array<i64: 64, 64>}, {pipeline_mode = #tpu.pipeline_mode<synchronous>, transform_indices = @transform_5, window_bounds = array<i64: 2, 32>}, {pipeline_mode = #tpu.pipeline_mode<synchronous>, transform_indices = @transform_6, window_bounds = array<i64: 3, 64>}, {transform_indices = @transform_7, window_bounds = array<i64: 8, 2>}]} {
    %c0 = arith.constant 0 : index
    %c0_0 = arith.constant 0 : index
    %0 = vector.load %arg1[%c0, %c0_0] : memref<8x8xf32, #tpu.memory_space<vmem>>, vector<8x8xf32>
    %c0_1 = arith.constant 0 : index
    %c0_2 = arith.constant 0 : index
    %1 = vector.load %arg3[%c0_1, %c0_2] : memref<8x64xf32, #tpu.memory_space<vmem>>, vector<8x64xf32>
    %cst = arith.constant dense<0.000000e+00> : vector<8x64xf32>
    %2 = tpu.matmul %0, %1, %cst {dimension_numbers = #tpu.dot_dimension_numbers<[1], [0], [0], [1], [0, 0, 1, 1], [], []>} : vector<8x8xf32>, vector<8x64xf32>, vector<8x64xf32> -> vector<8x64xf32>
    %c0_3 = arith.constant 0 : index
    %c0_4 = arith.constant 0 : index
    %3 = vector.load %arg2[%c0_3, %c0_4] : memref<8x4xf32, #tpu.memory_space<vmem>>, vector<8x4xf32>
    %c0_5 = arith.constant 0 : index
    %c0_6 = arith.constant 0 : index
    %4 = vector.load %arg4[%c0_5, %c0_6] : memref<4x64xf32, #tpu.memory_space<vmem>>, vector<4x64xf32>
    %cst_7 = arith.constant dense<0.000000e+00> : vector<8x64xf32>
    %5 = tpu.matmul %3, %4, %cst_7 {dimension_numbers = #tpu.dot_dimension_numbers<[1], [0], [0], [1], [0, 0, 1, 1], [], []>} : vector<8x4xf32>, vector<4x64xf32>, vector<8x64xf32> -> vector<8x64xf32>
    %6 = arith.addf %2, %5 : vector<8x64xf32>
    %c0_8 = arith.constant 0 : index
    %c0_9 = arith.constant 0 : index
    %7 = vector.load %arg7[%c0_8, %c0_9] : memref<3x64xf32, #tpu.memory_space<vmem>>, vector<1x64xf32>
    %8 = vector.broadcast %7 : vector<1x64xf32> to vector<8x64xf32>
    %9 = arith.addf %6, %8 : vector<8x64xf32>
    %cst_10 = arith.constant 0.000000e+00 : f32
    %10 = vector.broadcast %cst_10 : f32 to vector<8x64xf32>
    %11 = arith.maximumf %9, %10 : vector<8x64xf32>
    %c0_11 = arith.constant 0 : index
    %c0_12 = arith.constant 0 : index
    %12 = vector.load %arg5[%c0_11, %c0_12] : memref<64x64xf32, #tpu.memory_space<vmem>>, vector<64x64xf32>
    %cst_13 = arith.constant dense<0.000000e+00> : vector<8x64xf32>
    %13 = tpu.matmul %11, %12, %cst_13 {dimension_numbers = #tpu.dot_dimension_numbers<[1], [0], [0], [1], [0, 0, 1, 1], [], []>} : vector<8x64xf32>, vector<64x64xf32>, vector<8x64xf32> -> vector<8x64xf32>
    %c1 = arith.constant 1 : index
    %c0_14 = arith.constant 0 : index
    %14 = vector.load %arg7[%c1, %c0_14] : memref<3x64xf32, #tpu.memory_space<vmem>>, vector<1x64xf32>
    %15 = vector.broadcast %14 : vector<1x64xf32> to vector<8x64xf32>
    %16 = arith.addf %13, %15 : vector<8x64xf32>
    %cst_15 = arith.constant 0.000000e+00 : f32
    %17 = vector.broadcast %cst_15 : f32 to vector<8x64xf32>
    %18 = arith.maximumf %16, %17 : vector<8x64xf32>
    %19 = vector.extract_strided_slice %18 {offsets = [0, 0], sizes = [8, 32], strides = [1, 1]} : vector<8x64xf32> to vector<8x32xf32>
    %c0_16 = arith.constant 0 : index
    %c0_17 = arith.constant 0 : index
    %20 = vector.load %arg6[%c0_16, %c0_17] : memref<2x32xf32, #tpu.memory_space<vmem>>, vector<1x32xf32>
    %21 = vector.broadcast %20 : vector<1x32xf32> to vector<8x32xf32>
    %22 = arith.mulf %19, %21 : vector<8x32xf32>
    %cst_18 = arith.constant dense<0.000000e+00> : vector<8xf32>
    %23 = vector.multi_reduction <add>, %22, %cst_18 [1] : vector<8x32xf32> to vector<8xf32>
    %24 = vector.shape_cast %23 : vector<8xf32> to vector<8x1xf32>
    %c2 = arith.constant 2 : index
    %c0_19 = arith.constant 0 : index
    %25 = vector.load %arg7[%c2, %c0_19] : memref<3x64xf32, #tpu.memory_space<vmem>>, vector<1x1xf32>
    %26 = vector.broadcast %25 : vector<1x1xf32> to vector<8x1xf32>
    %27 = arith.addf %24, %26 : vector<8x1xf32>
    %28 = vector.extract_strided_slice %18 {offsets = [0, 32], sizes = [8, 32], strides = [1, 1]} : vector<8x64xf32> to vector<8x32xf32>
    %c1_20 = arith.constant 1 : index
    %c0_21 = arith.constant 0 : index
    %29 = vector.load %arg6[%c1_20, %c0_21] : memref<2x32xf32, #tpu.memory_space<vmem>>, vector<1x32xf32>
    %30 = vector.broadcast %29 : vector<1x32xf32> to vector<8x32xf32>
    %31 = arith.mulf %28, %30 : vector<8x32xf32>
    %cst_22 = arith.constant dense<0.000000e+00> : vector<8xf32>
    %32 = vector.multi_reduction <add>, %31, %cst_22 [1] : vector<8x32xf32> to vector<8xf32>
    %33 = vector.shape_cast %32 : vector<8xf32> to vector<8x1xf32>
    %c2_23 = arith.constant 2 : index
    %c1_24 = arith.constant 1 : index
    %34 = vector.load %arg7[%c2_23, %c1_24] : memref<3x64xf32, #tpu.memory_space<vmem>>, vector<1x1xf32>
    %35 = vector.broadcast %34 : vector<1x1xf32> to vector<8x1xf32>
    %36 = arith.addf %33, %35 : vector<8x1xf32>
    %37 = tpu.concatenate %27, %36 in 1 : vector<8x1xf32>, vector<8x1xf32> -> vector<8x2xf32>
    %c0_25 = arith.constant 0 : index
    %c0_26 = arith.constant 0 : index
    %38 = vector.load %arg8[%c0_25, %c0_26] : memref<8x2xf32, #tpu.memory_space<vmem>>, vector<8x2xf32>
    tpu.vector_store %arg8[%c0_25, %c0_26], %37 {strides = array<i32>} : memref<8x2xf32, #tpu.memory_space<vmem>>, vector<8x2xf32>,
    return
  }
  func.func @transform_0(%arg0: i32) -> (i32, i32) {
    %c0_i32 = arith.constant 0 : i32
    %c0_i32_0 = arith.constant 0 : i32
    return %arg0, %c0_i32 : i32, i32
  }
  func.func @transform_1(%arg0: i32) -> (i32, i32) {
    %c0_i32 = arith.constant 0 : i32
    %c0_i32_0 = arith.constant 0 : i32
    return %arg0, %c0_i32 : i32, i32
  }
  func.func @transform_2(%arg0: i32) -> (i32, i32) {
    %c0_i32 = arith.constant 0 : i32
    %c0_i32_0 = arith.constant 0 : i32
    %c0_i32_1 = arith.constant 0 : i32
    return %c0_i32, %c0_i32_0 : i32, i32
  }
  func.func @transform_3(%arg0: i32) -> (i32, i32) {
    %c0_i32 = arith.constant 0 : i32
    %c0_i32_0 = arith.constant 0 : i32
    %c0_i32_1 = arith.constant 0 : i32
    return %c0_i32, %c0_i32_0 : i32, i32
  }
  func.func @transform_4(%arg0: i32) -> (i32, i32) {
    %c0_i32 = arith.constant 0 : i32
    %c0_i32_0 = arith.constant 0 : i32
    %c0_i32_1 = arith.constant 0 : i32
    return %c0_i32, %c0_i32_0 : i32, i32
  }
  func.func @transform_5(%arg0: i32) -> (i32, i32) {
    %c0_i32 = arith.constant 0 : i32
    %c0_i32_0 = arith.constant 0 : i32
    %c0_i32_1 = arith.constant 0 : i32
    return %c0_i32, %c0_i32_0 : i32, i32
  }
  func.func @transform_6(%arg0: i32) -> (i32, i32) {
    %c0_i32 = arith.constant 0 : i32
    %c0_i32_0 = arith.constant 0 : i32
    %c0_i32_1 = arith.constant 0 : i32
    return %c0_i32, %c0_i32_0 : i32, i32
  }
  func.func @transform_7(%arg0: i32) -> (i32, i32) {
    %c0_i32 = arith.constant 0 : i32
    %c0_i32_0 = arith.constant 0 : i32
    return %arg0, %c0_i32 : i32, i32
  }
}

</mosaic_0001>

<bundles_post_ra>
// kernel: tpu_custom_call.1
= control target key start
LH: loop header
LB: loop body
LE: loop exit
PB: predicated region body
PF: predicated region fallthrough
CT: control target
= control target key end

     0   :  { %12 = vsyncpa [#allocation3], 0  ;;  %s429_s24 = smov [#allocation2]   ;;  %s522_s0 = inlined_call_operand.vmem [shape: f32[8,8], index: 0, kind: input, shape index: {}]   ;;  %s523_s1 = inlined_call_operand.vmem [shape: f32[8,4], index: 1, kind: input, shape index: {}]   ;;  %s524_s2 = inlined_call_operand.vmem [shape: f32[8,64], index: 2, kind: input, shape index: {}]   ;;  %s525_s3 = inlined_call_operand.vmem [shape: f32[4,64], index: 3, kind: input, shape index: {}]   ;;  %s526_s4 = inlined_call_operand.hbm [shape: f32[64,64], index: 4, kind: input, shape index: {}]   ;;  %s527_s5 = inlined_call_operand.vmem [shape: f32[2,32], index: 5, kind: input, shape index: {}]   ;;  %s528_s6 = inlined_call_operand.vmem [shape: f32[3,64], index: 6, kind: input, shape index: {}]   ;;  %s529_s7 = inlined_call_operand.vmem [shape: f32[8,2], index: 7, kind: output, shape index: {}]  }
   0x1   :  { %s26_s25 = sshll.u32 %s429_s24, 4  ;;  %s405_s28 = scalar_lea.hbm %s526_s4, 1024  ;;  %s27_s25 = int_to_ptr.vmem [resolvable:$true] %s26_s25 }
   0x2   :  { %p406_p0 = scmp.ne.s32.totalorder %s526_s4, %s405_s28  ;;  %p409_p1 = scmp.lt.u32.totalorder %s405_s28, %s526_s4 }
   0x4   :  { %p411_p2 = pnand %p409_p1, %p406_p0 }
   0x6   :  { %414 = shalt.err (!%p411_p2)
}
   0x7   :  { %s415_s10 = scalar_lea.vmem %s27_s25, 1024  ;;  %p420_p4 = scmp.lt.s32.totalorder %s27_s25, %s27_s25 }
   0x8   :  { %p416_p3 = scmp.ne.s32.totalorder %s27_s25, %s415_s10  ;;  %p421_p5 = scmp.lt.s32.totalorder %s415_s10, %s415_s10 }
   0xa   :  { %p422_p6 = por %p421_p5, %p420_p4 }
   0xc   :  { %p423_p7 = pnand %p422_p6, %p416_p3 }
   0xe   :  { %426 = shalt.err (!%p423_p7)
}
   0xf   :  { %s430_s11 = smov 128   ;;  %s431_s12 = smov 8  }
  0x10   :  { %32 = dma.hbm_to_vmem [thread:$0]  %s526_s4, 1024, %s27_s25, [#allocation3], %s430_s11, %s430_s11, %s431_s12  }
  0x11   :  { %427 = dma.done.wait [#allocation3], 1024  }
  0x12   :  { %428 = vsyncadd [#allocation3], 4294966272  ;;  %v432_v0 = vmov 0.0   ;;  %vm433_vm0 = vmmov 0   ;;  %v434_v1 = vmov 0.0|0.0   ;;  %vm48_vm1 = vcmask 1043456  }
  0x13   :  { %356 = vmatprep.subr.mxu1 %v432_v0  ;;  %358 = vmatprep.mubr.msk.f32.mxu1 %vm433_vm0, %v432_v0  ;;  %vm44_vm2 = vcmask 31744   ;;  %v43_v2 = vld [vmem:[%s525_s3] sm:$0xf]  ;;  %v204_v6 = vld [vmem:[#allocation2 + $0x8] sm:$0xff]  ;;  %vm122_vm3 = vcmask 64512   ;;  %v205_v9 = vld [vmem:[#allocation2 + $0x10] sm:$0xff] }
  0x14   :  { %385 = vmatprep.subr.bf16.mxu0 %v434_v1  ;;  %382 = vmatprep.mubr.msk.f32.mxu0 %vm433_vm0, %v432_v0  ;;  %v42_v3 = vld [vmem:[%s523_s1] sm:$0xff]  ;;  %v206_v10 = vld [vmem:[#allocation2 + $0x18] sm:$0xff]  ;;  %v208_v13 = vld [vmem:[#allocation2 + $0x28] sm:$0xff]  ;;  %vm216_vm4 = vcmask 523264   ;;  %vm297_vm5 = vcmask 261120   ;;  %s436_s27 = smov 96  }
  0x15   :  { %v41_v4 = vld [vmem:[%s524_s2] sm:$0xff]  ;;  %357 = vmatpush3.msk.msra.mxu1 %vm48_vm1, %v43_v2  ;;  %v389_v11 = vpack.c.bf16 %v206_v10, %v205_v9  ;;  %v209_v15 = vld [vmem:[#allocation2 + $0x30] sm:$0xff]  ;;  %v210_v16 = vld [vmem:[#allocation2 + $0x38] sm:$0xff]  ;;  %s435_s2 = smov 32   ;;  %vm325_vm6 = vcmask 7168   ;;  %vm327_vm7 = vcmask 15360  }
  0x16   :  { %v203_v5 = vld [vmem:[#allocation2] sm:$0xff]  ;;  %359 = vmatmul.mubr.msk.f32.vlgmr.msra.gmra.mrb[0].mxu1 %vm44_vm2, %v42_v3  ;;  %361 = vmatprep.subr.mxu1 %v432_v0  ;;  %v395_v17 = vpack.c.bf16 %v210_v16, %v209_v15 }
  0x17   :  { %v386_v7 = vpack.c.bf16 %v204_v6, %v203_v5  ;;  %362 = vmatpush3.msra.mxu1 %v41_v4  ;;  %363 = vmatprep.mubr.msk.f32.mxu1 %vm433_vm0, %v432_v0  ;;  %v40_v8 = vld [vmem:[%s522_s0] sm:$0xff] }
  0x18   :  { %v207_v12 = vld [vmem:[#allocation2 + $0x20] sm:$0xff] }
  0x19   :  { %387 = vmatpush3.bf16.msra.mxu0 %v386_v7  ;;  %v392_v14 = vpack.c.bf16 %v208_v13, %v207_v12  ;;  %v342_v18 = vld [vmem:[%s527_s5 + $0x1] ss:$0 sm:$0xff]  ;;  %v337_v22 = vld [vmem:[%s528_s6] ss:$0 sm:$0xff]  ;;  %v341_v40 = vld [vmem:[%s528_s6 + $0x2] ss:$0 sm:$0xff] }
  0x1a   :  { %388 = vmatprep.subr.bf16.mxu0 %v434_v1  ;;  %364 = vmatmul.mubr.msk.f32.vlgmr.msra.gmra.mrb[2].mxu1 %vm122_vm3, %v40_v8  ;;  %v338_v27 = vld [vmem:[%s528_s6 + $0x1] ss:$0 sm:$0xff]  ;;  %v340_v32 = vld [vmem:[%s527_s5] ss:$0 sm:$0xff] }
  0x1b   :  { %313 = vrot.lane.b32.xlu0 %v342_v18, %s435_s2 }
  0x1d   :  { %390 = vmatpush3.bf16.msra.mxu0 %v389_v11 }
  0x1e   :  { %391 = vmatprep.subr.bf16.mxu0 %v434_v1 }
  0x21   :  { %393 = vmatpush3.bf16.msra.mxu0 %v392_v14 }
  0x22   :  { %394 = vmatprep.subr.bf16.mxu0 %v434_v1 }
  0x25   :  { %396 = vmatpush3.bf16.msra.mxu0 %v395_v17 }
  0x8d   :  { %v314_v31 = vpop.permute.xlu0 %313 }
  0xe9   :  { %v118_v19 = vpop.f32.mrb[0].mxu1 }
  0xea   :  { %v360_v20 = vpop.f32.mrb[1].mxu1 }
  0xed   :  { %v192_v21 = vpop.f32.mrb[2].mxu1 }
  0xee   :  { %v193_v23 = vadd.f32 %v192_v21, %v118_v19  ;;  %v365_v24 = vpop.f32.mrb[3].mxu1 }
  0xf0   :  { %v201_v25 = vadd.f32 %v337_v22, %v193_v23 }
  0xf2   :  { %v202_v26 = vmax.f32 %v201_v25, 0.0 }
  0xf4   :  { %383 = vmatmul.mubr.msk.f32.vlgmr.msra.gmra.mrb[0].mxu0 %vm216_vm4, %v202_v26 }
 0x1c7   :  { %v286_v28 = vpop.f32.mrb[0].mxu0 }
 0x1c8   :  { %v287_v29 = vadd.f32 %v338_v27, %v286_v28  ;;  %v384_v30 = vpop.f32.mrb[1].mxu0 }
 0x1ca   :  { %v290_v33 = vmax.f32 %v287_v29, 0.0 }
 0x1cc   :  { %v316_v34 = vmul.f32 %v314_v31, %v290_v33  ;;  %v296_v35 = vmul.f32 %v340_v32, %v290_v33 }
 0x1ce   :  { %318 = vrot.lane.b32.xlu0 %v316_v34, %s436_s27  ;;  %v298_v36 = vsel %vm297_vm5, %v296_v35, 0.0 }
 0x1cf   :  { %299 = vadd.xlane.f32.xlu1 %v298_v36 }
 0x240   :  { %v319_v37 = vpop.permute.xlu0 %318 }
 0x241   :  { %v321_v38 = vsel %vm297_vm5, %v319_v37, 0.0 }
 0x242   :  { %322 = vadd.xlane.f32.xlu1 %v321_v38 }
 0x25c   :  { %v300_v39 = vpop.xlane.xlu1 %299 }
 0x25d   :  { %v306_v42 = vadd.f32 %v341_v40, %v300_v39 }
 0x2cf   :  { %v323_v41 = vpop.xlane.xlu1 %322 }
 0x2d0   :  { %v324_v43 = vadd.f32 %v341_v40, %v323_v41 }
 0x2d2   :  { %v326_v44 = vsel %vm325_vm6, %v306_v42, %v324_v43 }
 0x2d3   :  { %328 = vst.msk [vmem:[%s529_s7] sm:$0xff] %vm327_vm7, %v326_v44 }
 0x2d4   :  { %333 = vsyncpa [#allocation3], 1 }

</bundles_post_ra>
